<compile_context>
chip_gen: v5e
topology: v5e:2x2
jax: 0.10.0
libtpu: 0.0.40
codegen_flags: <defaults>
</compile_context>

<pallas_src>
import functools

import jax
import jax.numpy as jnp
import numpy as np
from jax import lax
from jax.experimental import pallas as pl
from jax.experimental.pallas import tpu as pltpu

_LANES = 128


def _cdiv(a, b):
    return -(-a // b)


def _round_up(a, b):
    return _cdiv(a, b) * b


def _mtl_kernel(out_ref, lab_ref, psum_ref, *, n_elems, need_mask):
    """Masked BCE-with-logits partial sum for one (rt, 128) block.

    out_ref, lab_ref : (rt, 128) blocks in their native dtype
    psum_ref         : (8, 128) f32; sublane 0 holds this block's per-lane sums
    """
    rt, lanes = out_ref.shape
    x = out_ref[...].astype(jnp.float32)
    y = lab_ref[...].astype(jnp.float32)

    mask = jnp.logical_not(jnp.isnan(y))
    if need_mask:
        # Ragged last block and/or minimal tail pad: exclude elements >= N.
        # (int32 flat index -> valid for N < 2**31 elements.)
        row = lax.broadcasted_iota(jnp.int32, (rt, lanes), 0)
        lane = lax.broadcasted_iota(jnp.int32, (rt, lanes), 1)
        idx = pl.program_id(0) * (rt * lanes) + row * lanes + lane
        mask = jnp.logical_and(mask, idx < n_elems)

    # Numerically stable BCE-with-logits (same formulation as PyTorch):
    #   loss = max(x, 0) - x*y + log(1 + exp(-|x|))
    # NaN labels propagate NaN through x*y and are zeroed by the final where;
    # garbage in ragged/padded regions is excluded by `mask`.
    per = jnp.maximum(x, 0.0) - x * y + jnp.log1p(jnp.exp(-jnp.abs(x)))
    per = jnp.where(mask, per, 0.0)

    # Per-lane partial sum (works for any rt, incl. the grid==1 full-dim block);
    # stored lane-dense in sublane 0 of a vreg-shaped (8, 128) output block.
    s = jnp.sum(per, axis=0, keepdims=True)                  # (1, 128)
    sub = lax.broadcasted_iota(jnp.int32, (8, lanes), 0)
    psum_ref[...] = jnp.where(sub == 0, s, 0.0)


def _pick_tiling(rows, row_tile):
    """Balanced row-tile / grid selection.

    - rt is a multiple of 32 rows (satisfies f32/bf16/int8 sublane tiling),
    - blocks are balanced (no nearly-empty last block),
    - grid is >= 2 and even when the problem is big enough (v7x megacore),
    - a single block uses the full row dim (exempt from (8,128) tiling).
    """
    nb = _cdiv(rows, max(int(row_tile), 1))
    if nb == 1 and rows >= 64:
        nb = 2                       # let v7x shard across both TensorCores
    if nb > 1:
        if nb % 2:
            nb += 1                  # prefer an even grid for megacore
        rt = _round_up(_cdiv(rows, nb), 32)
        grid = _cdiv(rows, rt)
        if grid > 1:
            return rt, grid
    return rows, 1                   # one full-dim block


@functools.partial(jax.jit,
                   static_argnames=("reduction", "row_tile", "return_valid"))
def multi_task_loss(output, label, reduction="mean", row_tile=8192,
                    return_valid=True):
    """Pallas implementation of MultiTaskLoss.forward.

    Returns (loss, valid_output_padded, valid_label_padded, n_valid).
    valid_* are length N = output.size with the valid entries compacted to
    the front in row-major order (torch.masked_select semantics); the tail is
    zero-filled.  With return_valid=False they are None (loss-only fast path).
    NOTE: zero valid labels with reduction='mean' gives NaN, matching PyTorch.
    """
    N = output.size
    out_flat = output.reshape(-1)
    lab_flat = label.reshape(-1)

    # ---- lane-dense (rows, 128) view, native dtype, minimal/no padding -----
    rows = _cdiv(N, _LANES)
    tail = rows * _LANES - N
    # TODO(synk): a fully pad-free path for N % 128 != 0 would need manual DMA
    # (memory_space=pl.ANY); this tail pad is the only remaining input copy.
    out_src = jnp.pad(out_flat, (0, tail)) if tail else out_flat
    lab_src = jnp.pad(lab_flat, (0, tail)) if tail else lab_flat
    out2d = out_src.reshape(rows, _LANES)
    lab2d = lab_src.reshape(rows, _LANES)

    rt, grid = _pick_tiling(rows, row_tile)
    need_mask = bool(tail) or (rows % rt != 0)

    # Right-size scoped VMEM: 2 double-buffered input blocks + slack.
    in_block_bytes = rt * _LANES * (output.dtype.itemsize + label.dtype.itemsize)
    vmem_bytes = int(min(max(2 * in_block_bytes + (2 << 20), 4 << 20), 32 << 20))

    psum = pl.pallas_call(
        functools.partial(_mtl_kernel, n_elems=N, need_mask=need_mask),
        out_shape=jax.ShapeDtypeStruct((grid * 8, _LANES), jnp.float32),
        grid_spec=pltpu.PrefetchScalarGridSpec(
            num_scalar_prefetch=0,
            grid=(grid,),
            in_specs=[
                pl.BlockSpec((rt, _LANES), lambda i: (i, 0)),
                pl.BlockSpec((rt, _LANES), lambda i: (i, 0)),
            ],
            out_specs=pl.BlockSpec((8, _LANES), lambda i: (i, 0)),
        ),
        compiler_params=pltpu.CompilerParams(
            # No cross-step carry -> grid axis is parallel (v7x: both TCs).
            dimension_semantics=("parallel",),
            vmem_limit_bytes=vmem_bytes,
        ),
    )(out2d, lab2d)

    loss_sum = jnp.sum(psum)

    # ---- glue: emulate torch.masked_select (fixed-size compaction) ---------
    # TODO(synk): the cumsum + scatter below runs as XLA ops over the full
    # tensors; a Pallas compaction kernel (per-block prefix counts + pl.ds
    # stores) could replace it if this path ever dominates wall-clock.
    if return_valid:
        flat_mask = jnp.logical_not(jnp.isnan(lab_flat))
        csum = jnp.cumsum(flat_mask.astype(jnp.int32))
        n_valid = csum[-1]
        dest = jnp.where(flat_mask, csum - 1, N)   # invalid -> OOB -> dropped
        valid_output = jnp.zeros((N,), jnp.float32).at[dest].set(
            out_flat.astype(jnp.float32), mode="drop")
        valid_label = jnp.zeros((N,), jnp.float32).at[dest].set(
            lab_flat.astype(jnp.float32), mode="drop")
    else:
        n_valid = jnp.sum(jnp.logical_not(jnp.isnan(lab_flat)).astype(jnp.int32))
        valid_output = valid_label = None

    if reduction == "mean":
        loss = loss_sum / n_valid.astype(jnp.float32)
    elif reduction == "sum":
        loss = loss_sum
    else:
        raise ValueError(f"unsupported reduction: {reduction}")

    return loss, valid_output, valid_label, n_valid


# ----------------------------- reference / tests -----------------------------
def _reference(output, label, reduction="mean"):
    x = output.astype(jnp.float32)
    lab = label.astype(jnp.float32)
    mask = jnp.logical_not(jnp.isnan(lab))
    y = jnp.where(mask, lab, 0.0)
    per = jnp.maximum(x, 0.0) - x * y + jnp.log1p(jnp.exp(-jnp.abs(x)))
    per = jnp.where(mask, per, 0.0)
    s = jnp.sum(per)
    if reduction == "mean":
        return s / jnp.sum(mask.astype(jnp.float32))
    return s


def _check(output, label, **kw):
    loss, valid_output, valid_label, n_valid = multi_task_loss(output, label, **kw)
    jax.block_until_ready((loss, valid_output, valid_label, n_valid))

    ref = _reference(output, label, kw.get("reduction", "mean"))
    assert jnp.allclose(loss, ref, atol=1e-5, rtol=1e-5), (loss, ref)

    out_np = np.asarray(jnp.asarray(output, jnp.float32)).reshape(-1)
    lab_np = np.asarray(jnp.asarray(label, jnp.float32)).reshape(-1)
    m = ~np.isnan(lab_np)
    nv = int(n_valid)
    assert nv == int(m.sum()), (nv, int(m.sum()))
    assert np.allclose(np.asarray(valid_output)[:nv], out_np[m], atol=1e-6)
    assert np.allclose(np.asarray(valid_label)[:nv], lab_np[m], atol=1e-6)
    assert not np.any(np.isnan(np.asarray(valid_label)))


if __name__ == "__main__":
    key = jax.random.PRNGKey(0)
    ks = jax.random.split(key, 12)

    def make(kx, kl, km, shape, nan_frac, dtype=jnp.float32):
        out = jax.random.normal(kx, shape, dtype=jnp.float32).astype(dtype)
        lab = jax.random.bernoulli(kl, 0.5, shape).astype(jnp.float32)
        lab = jnp.where(jax.random.bernoulli(km, nan_frac, shape), jnp.nan, lab)
        return out, lab

    # Case 1: 16 x 128 — N % 128 == 0, single block, no index mask.
    o, l = make(ks[0], ks[1], ks[2], (16, 128), 0.3)
    _check(o, l)

    # Case 2: 64 x 50 — rows=25 (not a multiple of 8), single full-dim block.
    o, l = make(ks[3], ks[4], ks[5], (64, 50), 0.25)
    _check(o, l)
    _check(o, l, reduction="sum")

    # Case 3: 72 x 128 — grid=2 with a ragged last block (index mask active).
    o, l = make(ks[6], ks[7], ks[8], (72, 128), 0.4)
    _check(o, l)

    # Case 4: 30 x 37 bf16 logits — minimal tail pad path (N % 128 != 0).
    o, l = make(ks[9], ks[10], ks[11], (30, 37), 0.2, dtype=jnp.bfloat16)
    _check(o, l)

    print("KERNEL_OK")
</pallas_src>

<mosaic_0001>
module attributes {stable_mosaic.version = 11 : i64} {
  func.func @_mtl_kernel(%arg0: i32, %arg1: memref<16x128xf32, #tpu.memory_space<vmem>>, %arg2: memref<16x128xf32, #tpu.memory_space<vmem>>, %arg3: memref<8x128xf32, #tpu.memory_space<vmem>>) attributes {dimension_semantics = [#tpu.dimension_semantics<parallel>], iteration_bounds = array<i64: 1>, scalar_prefetch = 0 : i64, scratch_operands = 0 : i64, tpu.core_type = #tpu.core_type<tc>, window_params = [{transform_indices = @transform_0, window_bounds = array<i64: 16, 128>}, {transform_indices = @transform_1, window_bounds = array<i64: 16, 128>}, {transform_indices = @transform_2, window_bounds = array<i64: 8, 128>}]} {
    %c0 = arith.constant 0 : index
    %c0_0 = arith.constant 0 : index
    %0 = vector.load %arg1[%c0, %c0_0] : memref<16x128xf32, #tpu.memory_space<vmem>>, vector<16x128xf32>
    %c0_1 = arith.constant 0 : index
    %c0_2 = arith.constant 0 : index
    %1 = vector.load %arg2[%c0_1, %c0_2] : memref<16x128xf32, #tpu.memory_space<vmem>>, vector<16x128xf32>
    %2 = arith.cmpf one, %1, %1 : vector<16x128xf32>
    %cst = arith.constant dense<true> : vector<16x128xi1>
    %3 = arith.xori %2, %cst : vector<16x128xi1>
    %cst_3 = arith.constant 0.000000e+00 : f32
    %4 = vector.broadcast %cst_3 : f32 to vector<16x128xf32>
    %5 = arith.maximumf %0, %4 : vector<16x128xf32>
    %6 = arith.mulf %0, %1 : vector<16x128xf32>
    %7 = arith.subf %5, %6 : vector<16x128xf32>
    %8 = math.absf %0 : vector<16x128xf32>
    %cst_4 = arith.constant 0.000000e+00 : f32
    %9 = vector.broadcast %cst_4 : f32 to vector<16x128xf32>
    %10 = arith.subf %9, %8 : vector<16x128xf32>
    %11 = math.exp %10 : vector<16x128xf32>
    %12 = math.log1p %11 : vector<16x128xf32>
    %13 = arith.addf %7, %12 : vector<16x128xf32>
    %cst_5 = arith.constant 0.000000e+00 : f32
    %14 = vector.broadcast %cst_5 : f32 to vector<16x128xf32>
    %15 = arith.select %3, %13, %14 : vector<16x128xi1>, vector<16x128xf32>
    %cst_6 = arith.constant dense<0.000000e+00> : vector<128xf32>
    %16 = vector.multi_reduction <add>, %15, %cst_6 [0] : vector<16x128xf32> to vector<128xf32>
    %17 = vector.shape_cast %16 : vector<128xf32> to vector<1x128xf32>
    %18 = tpu.iota {dimensions = array<i32: 0>} : vector<8x128xi32>
    %c0_i32 = arith.constant 0 : i32
    %19 = vector.broadcast %c0_i32 : i32 to vector<8x128xi32>
    %20 = arith.cmpi eq, %18, %19 : vector<8x128xi32>
    %cst_7 = arith.constant 0.000000e+00 : f32
    %21 = vector.shape_cast %17 : vector<1x128xf32> to vector<1x128xf32>
    %22 = vector.broadcast %21 : vector<1x128xf32> to vector<8x128xf32>
    %23 = vector.broadcast %cst_7 : f32 to vector<8x128xf32>
    %24 = arith.select %20, %22, %23 : vector<8x128xi1>, vector<8x128xf32>
    %c0_8 = arith.constant 0 : index
    %c0_9 = arith.constant 0 : index
    %25 = vector.load %arg3[%c0_8, %c0_9] : memref<8x128xf32, #tpu.memory_space<vmem>>, vector<8x128xf32>
    tpu.vector_store %arg3[%c0_8, %c0_9], %24 {strides = array<i32>} : memref<8x128xf32, #tpu.memory_space<vmem>>, vector<8x128xf32>,
    return
  }
  func.func @transform_0(%arg0: i32) -> (i32, i32) {
    %c0_i32 = arith.constant 0 : i32
    %c0_i32_0 = arith.constant 0 : i32
    return %arg0, %c0_i32 : i32, i32
  }
  func.func @transform_1(%arg0: i32) -> (i32, i32) {
    %c0_i32 = arith.constant 0 : i32
    %c0_i32_0 = arith.constant 0 : i32
    return %arg0, %c0_i32 : i32, i32
  }
  func.func @transform_2(%arg0: i32) -> (i32, i32) {
    %c0_i32 = arith.constant 0 : i32
    %c0_i32_0 = arith.constant 0 : i32
    return %arg0, %c0_i32 : i32, i32
  }
}

</mosaic_0001>

<bundles_post_ra>
// kernel: multi_task_loss.1
= control target key start
LH: loop header
LB: loop body
LE: loop exit
PB: predicated region body
PF: predicated region fallthrough
CT: control target
= control target key end

     0   :  { %7 = vsyncpa [#allocation3], 0  ;;  %s199_s0 = inlined_call_operand.hbm [shape: f32[16,128], index: 0, kind: input, shape index: {}]   ;;  %s200_s1 = inlined_call_operand.hbm [shape: f32[16,128], index: 1, kind: input, shape index: {}]   ;;  %s201_s2 = inlined_call_operand.vmem [shape: f32[8,128], index: 2, kind: output, shape index: {}]  }
   0x1   :  { %s13_s11 = sshll.u32 %s199_s0, 4  ;;  %s14_s11 = int_to_ptr.hbm [resolvable:$true] %s13_s11 }
   0x2   :  { %8 = vsyncpa [#allocation5], 0  ;;  %s170_s12 = smov [#allocation2]   ;;  %s26_s16 = sshll.u32 %s200_s1, 4  ;;  %s27_s16 = int_to_ptr.hbm [resolvable:$true] %s26_s16 }
   0x3   :  { %s15_s13 = sshll.u32 %s170_s12, 4  ;;  %s171_s17 = smov 128   ;;  %s16_s13 = int_to_ptr.vmem [resolvable:$true] %s15_s13 }
   0x4   :  { %s172_s18 = smov 8   ;;  %s173_s19 = smov [#allocation4]  }
   0x5   :  { %21 = dma.hbm_to_vmem [thread:$0]  %s14_s11, 256, %s16_s13, [#allocation3], %s171_s17, %s171_s17, %s172_s18  }
   0x6   :  { %s28_s20 = sshll.u32 %s173_s19, 4  ;;  %s29_s20 = int_to_ptr.vmem [resolvable:$true] %s28_s20 }
   0x7   :  { %34 = dma.hbm_to_vmem [thread:$0]  %s27_s16, 256, %s29_s20, [#allocation5], %s171_s17, %s171_s17, %s172_s18  }
   0x8   :  { %166 = dma.done.wait [#allocation3], 256  }
   0x9   :  { %167 = vsyncadd [#allocation3], 4294967040 }
   0xa   :  { %168 = dma.done.wait [#allocation5], 256  }
   0xb   :  { %169 = vsyncadd [#allocation5], 4294967040  ;;  %v43_v0 = vld [vmem:[#allocation2] sm:$0xff]  ;;  %v44_v1 = vld [vmem:[#allocation2 + $0x8] sm:$0xff]  ;;  %vm174_vm4 = vmmov 1   ;;  %v94_v40 = vlaneseq }
   0xc   :  { %v57_v2 = vand.u32 2147483647, %v43_v0  ;;  %v58_v3 = vand.u32 2147483647, %v44_v1  ;;  %v45_v12 = vld [vmem:[#allocation4] sm:$0xff]  ;;  %v46_v15 = vld [vmem:[#allocation4 + $0x8] sm:$0xff] }
   0xd   :  { %v51_v17 = vmax.f32 %v43_v0, 0.0  ;;  %v53_v18 = vmul.f32 %v45_v12, %v43_v0  ;;  %v52_v21 = vmax.f32 %v44_v1, 0.0  ;;  %v54_v22 = vmul.f32 %v46_v15, %v44_v1 }
   0xe   :  { %v59_v4 = vsub.f32 0.0, %v57_v2  ;;  %v60_v5 = vsub.f32 0.0, %v58_v3  ;;  %vm47_vm0 = vcmp.ne.f32.partialorder %v45_v12, %v45_v12  ;;  %vm48_vm2 = vcmp.ne.f32.partialorder %v46_v15, %v46_v15 }
   0xf   :  { %v55_v26 = vsub.f32 %v51_v17, %v53_v18  ;;  %v56_v29 = vsub.f32 %v52_v21, %v54_v22  ;;  %vm49_vm5 = vmxor %vm47_vm0, %vm174_vm4  ;;  %v95_v43 = vshrl.u32 %v94_v40, 7 }
  0x10   :  { %v61_v6 = vmul.f32 1.442695, %v59_v4  ;;  %v63_v7 = vmul.f32 1.442695, %v60_v5  ;;  %vm50_vm6 = vmxor %vm48_vm2, %vm174_vm4 }
  0x11   :  { %vm96_vm7 = vcmp.eq.s32.totalorder %v95_v43, 0 }
  0x12   :  { %110 = vpow2.f32 %v61_v6 }
  0x13   :  { %112 = vpow2.f32 %v63_v7 }
  0x18   :  { %v111_v8 = vpop.eup %110 }
  0x19   :  { %v113_v9 = vpop.eup %112  ;;  %v65_v10 = vadd.f32 1.0, %v111_v8  ;;  %v68_v11 = vmul.f32 -0.5, %v111_v8  ;;  %v71_v19 = vand.u32 2147483647, %v111_v8 }
  0x1a   :  { %v74_v13 = vadd.f32 1.0, %v113_v9  ;;  %v77_v14 = vmul.f32 -0.5, %v113_v9  ;;  %v80_v23 = vand.u32 2147483647, %v113_v9 }
  0x1b   :  { %114 = vlog2.f32 %v65_v10  ;;  %v69_v16 = vadd.f32 1.0, %v68_v11  ;;  %vm72_vm1 = vcmp.lt.f32.partialorder %v71_v19, 0.0004427343 }
  0x1c   :  { %116 = vlog2.f32 %v74_v13  ;;  %v78_v20 = vadd.f32 1.0, %v77_v14  ;;  %vm81_vm3 = vcmp.lt.f32.partialorder %v80_v23, 0.0004427343 }
  0x1d   :  { %v70_v24 = vmul.f32 %v111_v8, %v69_v16 }
  0x1e   :  { %v79_v27 = vmul.f32 %v113_v9, %v78_v20 }
  0x21   :  { %v115_v25 = vpop.eup %114 }
  0x22   :  { %v117_v28 = vpop.eup %116  ;;  %v67_v30 = vmul.f32 0.6931472, %v115_v25 }
  0x23   :  { %v76_v31 = vmul.f32 0.6931472, %v117_v28 }
  0x24   :  { %v73_v32 = vsel %vm72_vm1, %v70_v24, %v67_v30 }
  0x25   :  { %v82_v33 = vsel %vm81_vm3, %v79_v27, %v76_v31  ;;  %v83_v34 = vadd.f32 %v73_v32, %v55_v26 }
  0x26   :  { %v84_v35 = vadd.f32 %v82_v33, %v56_v29 }
  0x27   :  { %v85_v36 = vsel %vm49_vm5, %v83_v34, 0.0 }
  0x28   :  { %v86_v37 = vsel %vm50_vm6, %v84_v35, 0.0 }
  0x29   :  { %v87_v38 = vadd.f32 %v86_v37, %v85_v36 }
  0x2b   :  { %v88_v39 = vrot.slane %v87_v38, 4 }
  0x2d   :  { %v89_v41 = vadd.f32 %v88_v39, %v87_v38 }
  0x2f   :  { %v90_v42 = vrot.slane %v89_v41, 2 }
  0x31   :  { %v91_v44 = vadd.f32 %v90_v42, %v89_v41 }
  0x33   :  { %v92_v45 = vrot.slane %v91_v44, 1 }
  0x35   :  { %v93_v46 = vadd.f32 %v92_v45, %v91_v44 }
  0x37   :  { %v97_v47 = vsel %vm96_vm7, %v93_v46, 0.0 }
  0x38   :  { %98 = vst [vmem:[%s201_s2] sm:$0xff] %v97_v47 }
  0x39   :  { %103 = vsyncpa [#allocation3], 1 }
  0x3a   :  { %104 = vsyncpa [#allocation5], 1 }

</bundles_post_ra>
